<compile_context>
chip_gen: v6e
topology: v6e:2x2x1
jax: 0.10.0
libtpu: 0.0.40
codegen_flags: <defaults>
</compile_context>

<pallas_src>
import functools

import jax
import jax.numpy as jnp
from jax.experimental import pallas as pl
from jax.experimental.pallas import tpu as pltpu


# ---------------------------------------------------------------------------
# Pallas kernel: memory-bound per-element affine transform of y.
#   forward: out = (y + shift) * scale          (scale = exp(+logs))
#   reverse: out = y * scale - shift            (scale = exp(-logs))
# ---------------------------------------------------------------------------
def _affine_kernel(y_ref, scale_ref, shift_ref, out_ref, *, reverse):
    yv = y_ref[...].astype(jnp.float32)       # (row_tile, hw_tile)
    sc = scale_ref[...]                       # (row_tile, 1) f32
    sh = shift_ref[...]                       # (row_tile, 1) f32
    if not reverse:
        out = (yv + sh) * sc
    else:
        out = yv * sc - sh
    out_ref[...] = out.astype(out_ref.dtype)


def _round_up(n, m):
    return ((n + m - 1) // m) * m


def _pick_tiles(rows, hw, itemsize):
    """Lane-dense tiles of ~<=4 MiB; guarantee >=2 grid blocks (v7x megacore).

    Every returned tile dim is either a multiple of the hardware tiling
    (sublane mult / 128 lanes) or equal to the full array dim, so it is always
    a legal BlockSpec; boundary blocks are handled by the cdiv grid (padded
    reads, masked writes).
    """
    lane_mult = 128
    sub_mult = max(8, 32 // itemsize)          # 8 f32, 16 bf16, 32 int8/fp8

    hw_tile = hw if hw <= 4096 else 4096       # full dim, or multiple of 128
    target_rows = max(sub_mult, (4 << 20) // (hw_tile * itemsize))
    if rows <= target_rows:
        row_tile = rows                        # full dim -> always legal
    else:
        row_tile = _round_up(target_rows, sub_mult)

    # v7x has 2 TensorCores; a (1,1) grid would leave one idle.
    if pl.cdiv(rows, row_tile) * pl.cdiv(hw, hw_tile) < 2:
        if rows > sub_mult:
            row_tile = _round_up(pl.cdiv(rows, 2), sub_mult)
        elif hw > lane_mult:
            hw_tile = _round_up(pl.cdiv(hw, 2), lane_mult)
    return row_tile, hw_tile


@functools.partial(jax.jit, static_argnames=("reverse",))
def cond_actnorm_forward(x, y, weight_t, bias_lin, logdet, *, reverse=False):
    """x: (B, x_hidden)  y: (B, C, H, W)  weight_t: (x_hidden, 2C)
       bias_lin: (1, 2C) or (2C,)  logdet: (B,)  ->  (y_out NCHW, logdet (B,) f32)"""
    B, C, H, W = y.shape
    HW = H * W
    rows = B * C

    # --- tiny conditioning pass: plain XLA (fuses into one small fusion) ---
    h = jnp.tanh(
        jnp.dot(x.astype(jnp.float32), weight_t.astype(jnp.float32),
                preferred_element_type=jnp.float32)
        + bias_lin.reshape(1, 2 * C).astype(jnp.float32))            # (B, 2C)
    logs, bias = h[:, :C], h[:, C:]
    sign = -1.0 if reverse else 1.0
    scale = jnp.exp(sign * logs)                                     # (B, C)
    ld_out = logdet.astype(jnp.float32) + sign * HW * jnp.sum(logs, axis=1)

    # --- tiled, pipelined elementwise pass over y (the HBM-bound part) -----
    y2d = y.reshape(rows, HW)                  # lane axis = H*W (lane-dense)
    scale2d = scale.reshape(rows, 1)
    shift2d = bias.reshape(rows, 1)

    itemsize = jnp.dtype(y.dtype).itemsize
    row_tile, hw_tile = _pick_tiles(rows, HW, itemsize)
    grid = (pl.cdiv(rows, row_tile), pl.cdiv(HW, hw_tile))

    affine = functools.partial(_affine_kernel, reverse=reverse)
    out2d = pl.pallas_call(
        affine,
        out_shape=jax.ShapeDtypeStruct((rows, HW), y.dtype),
        grid=grid,
        in_specs=[
            pl.BlockSpec((row_tile, hw_tile), lambda i, j: (i, j)),
            pl.BlockSpec((row_tile, 1), lambda i, j: (i, 0)),
            pl.BlockSpec((row_tile, 1), lambda i, j: (i, 0)),
        ],
        out_specs=pl.BlockSpec((row_tile, hw_tile), lambda i, j: (i, j)),
        input_output_aliases={0: 0},           # write back into y's HBM buffer
        compiler_params=pltpu.CompilerParams(
            dimension_semantics=("parallel", "parallel"),
            vmem_limit_bytes=32 << 20),
        cost_estimate=pl.CostEstimate(
            flops=2 * rows * HW,
            transcendentals=0,
            bytes_accessed=2 * rows * HW * itemsize + 2 * rows * 4),
    )(y2d, scale2d, shift2d)

    return out2d.reshape(B, C, H, W), ld_out


# ---------------------------------------------------------------------------
# Pure-JAX reference (mirrors the PyTorch module).
# ---------------------------------------------------------------------------
def _reference(x, y, weight_t, bias_lin, logdet, reverse=False):
    B, C, H, W = y.shape
    h = jnp.tanh(x.astype(jnp.float32) @ weight_t.astype(jnp.float32)
                 + bias_lin.reshape(1, -1).astype(jnp.float32))       # (B, 2C)
    logs = h[:, :C].reshape(B, C, 1, 1)
    bias = h[:, C:].reshape(B, C, 1, 1)
    dims = H * W
    y32 = y.astype(jnp.float32)
    if not reverse:
        y2 = (y32 + bias) * jnp.exp(logs)
        dlog = dims * jnp.sum(logs, axis=(1, 2, 3))
    else:
        y2 = y32 * jnp.exp(-logs) - bias
        dlog = -dims * jnp.sum(logs, axis=(1, 2, 3))
    return y2, logdet + dlog


if __name__ == "__main__":
    B, C, H, W = 2, 4, 16, 16          # y_channels = 4
    x_hidden_size = 32

    key = jax.random.PRNGKey(0)
    kx, ky, kw, kb = jax.random.split(key, 4)

    x = jax.random.normal(kx, (B, x_hidden_size), dtype=jnp.float32)
    y = jax.random.normal(ky, (B, C, H, W), dtype=jnp.float32)
    logdet = jnp.zeros((B,), dtype=jnp.float32)

    # LinearZeros zero-inits its params (which would make the op an identity);
    # use small deterministic random params instead so the kernel is exercised.
    weight_t = 0.05 * jax.random.normal(kw, (x_hidden_size, 2 * C), jnp.float32)
    bias_lin = 0.05 * jax.random.normal(kb, (1, 2 * C), jnp.float32)

    # forward (f32 y)
    y_out, ld_out = cond_actnorm_forward(x, y, weight_t, bias_lin, logdet,
                                         reverse=False)
    jax.block_until_ready((y_out, ld_out))
    y_ref, ld_ref = _reference(x, y, weight_t, bias_lin, logdet, reverse=False)
    assert jnp.allclose(y_out, y_ref, atol=1e-5, rtol=1e-5)
    assert jnp.allclose(ld_out, ld_ref, atol=1e-4, rtol=1e-5)

    # reverse (f32 y)
    y_rev, ld_rev = cond_actnorm_forward(x, y, weight_t, bias_lin, logdet,
                                         reverse=True)
    jax.block_until_ready((y_rev, ld_rev))
    y_rref, ld_rref = _reference(x, y, weight_t, bias_lin, logdet, reverse=True)
    assert jnp.allclose(y_rev, y_rref, atol=1e-5, rtol=1e-5)
    assert jnp.allclose(ld_rev, ld_rref, atol=1e-4, rtol=1e-5)

    # bf16 I/O path on y (halves HBM traffic; compute stays f32 in-kernel)
    y_bf = y.astype(jnp.bfloat16)
    y_bout, ld_bout = cond_actnorm_forward(x, y_bf, weight_t, bias_lin, logdet,
                                           reverse=False)
    jax.block_until_ready((y_bout, ld_bout))
    y_bref, _ = _reference(x, y_bf, weight_t, bias_lin, logdet, reverse=False)
    assert jnp.allclose(y_bout.astype(jnp.float32), y_bref, atol=5e-2, rtol=5e-2)

    print("KERNEL_OK")
</pallas_src>

<mosaic_0001>
module attributes {stable_mosaic.version = 11 : i64} {
  func.func @_affine_kernel(%arg0: i32, %arg1: i32, %arg2: memref<8x128xf32, #tpu.memory_space<vmem>>, %arg3: memref<8x1xf32, #tpu.memory_space<vmem>>, %arg4: memref<8x1xf32, #tpu.memory_space<vmem>>, %arg5: memref<8x128xf32, #tpu.memory_space<vmem>>) attributes {dimension_semantics = [#tpu.dimension_semantics<parallel>, #tpu.dimension_semantics<parallel>], iteration_bounds = array<i64: 1, 2>, scalar_prefetch = 0 : i64, scratch_operands = 0 : i64, tpu.core_type = #tpu.core_type<tc>, window_params = [{transform_indices = @transform_0, window_bounds = array<i64: 8, 128>}, {transform_indices = @transform_1, window_bounds = array<i64: 8, 1>}, {transform_indices = @transform_2, window_bounds = array<i64: 8, 1>}, {transform_indices = @transform_3, window_bounds = array<i64: 8, 128>}]} {
    %c0 = arith.constant 0 : index
    %c0_0 = arith.constant 0 : index
    %0 = vector.load %arg2[%c0, %c0_0] : memref<8x128xf32, #tpu.memory_space<vmem>>, vector<8x128xf32>
    %c0_1 = arith.constant 0 : index
    %c0_2 = arith.constant 0 : index
    %1 = vector.load %arg3[%c0_1, %c0_2] : memref<8x1xf32, #tpu.memory_space<vmem>>, vector<8x1xf32>
    %c0_3 = arith.constant 0 : index
    %c0_4 = arith.constant 0 : index
    %2 = vector.load %arg4[%c0_3, %c0_4] : memref<8x1xf32, #tpu.memory_space<vmem>>, vector<8x1xf32>
    %3 = vector.broadcast %2 : vector<8x1xf32> to vector<8x128xf32>
    %4 = arith.addf %0, %3 : vector<8x128xf32>
    %5 = vector.broadcast %1 : vector<8x1xf32> to vector<8x128xf32>
    %6 = arith.mulf %4, %5 : vector<8x128xf32>
    %c0_5 = arith.constant 0 : index
    %c0_6 = arith.constant 0 : index
    %7 = vector.load %arg5[%c0_5, %c0_6] : memref<8x128xf32, #tpu.memory_space<vmem>>, vector<8x128xf32>
    tpu.vector_store %arg5[%c0_5, %c0_6], %6 {strides = array<i32>} : memref<8x128xf32, #tpu.memory_space<vmem>>, vector<8x128xf32>,
    return
  }
  func.func @transform_0(%arg0: i32, %arg1: i32) -> (i32, i32) {
    %c0_i32 = arith.constant 0 : i32
    return %arg0, %arg1 : i32, i32
  }
  func.func @transform_1(%arg0: i32, %arg1: i32) -> (i32, i32) {
    %c0_i32 = arith.constant 0 : i32
    %c0_i32_0 = arith.constant 0 : i32
    return %arg0, %c0_i32 : i32, i32
  }
  func.func @transform_2(%arg0: i32, %arg1: i32) -> (i32, i32) {
    %c0_i32 = arith.constant 0 : i32
    %c0_i32_0 = arith.constant 0 : i32
    return %arg0, %c0_i32 : i32, i32
  }
  func.func @transform_3(%arg0: i32, %arg1: i32) -> (i32, i32) {
    %c0_i32 = arith.constant 0 : i32
    return %arg0, %arg1 : i32, i32
  }
}

</mosaic_0001>

<bundles_post_ra>
// kernel: cond_actnorm_forward.1
= control target key start
LH: loop header
LB: loop body
LE: loop exit
PB: predicated region body
PF: predicated region fallthrough
CT: control target
= control target key end

     0   :  { %s448_s12 = smov 0   ;;  %s450_s13 = smov 0   ;;  %s480_s0 = inlined_call_operand.vmem [shape: f32[8,256], index: 0, kind: input, shape index: {}, may-alias: {0,3}]   ;;  %s481_s1 = inlined_call_operand.vmem [shape: f32[8,1], index: 1, kind: input, shape index: {}]   ;;  %s482_s2 = inlined_call_operand.vmem [shape: f32[8,1], index: 2, kind: input, shape index: {}]   ;;  %s483_s3 = inlined_call_operand.vmem [shape: f32[8,256], index: 3, kind: output, shape index: {}, may-alias: {0,3}]  }
   0x1   :  { %s452_s14 = smov 0  }
   0x2 LB: > { %s22_s15 = sadd.s32 1, %s421_s13  ;;  %p372_p0 = scmp.ge.s32.totalorder %s425_s14, 1  ;;  %s425_s14 = sphi %s452_s14, %s13_s14   ;;  %s421_s13 = sphi %s450_s13, %s485_s13   ;;  %s417_s12 = sphi %s448_s12, %s484_s12  }
   0x3   : > { %p23_p1 = scmp.ge.s32.totalorder %s22_s15, 2  ;;  %p174_p2 = scmp.lt.s32.totalorder %s425_s14, 3 }
   0x5   : > { %s487_s15 = smov (%p23_p1, %s22_s15), 0  ;;  %p175_p3 = pnand %p372_p0, %p174_p2 }
   0x6   : > { %p214_p4 = scmp.lt.s32.totalorder (!%p175_p3), %s417_s12, 1 }
   0x7   : > { %178 = sbr.rel (%p175_p3) target bundleno = 145 (0x91), region = 32 }
   0xc   : > { %v238_v0 = vld [vmem:[%s482_s2] sm:$0xff]  ;;  %v427_v1 = vmov 0   ;;  %s489_s12 = smov (!%p214_p4, %s417_s12), 1 }
   0xd   : > { %402 = vset.pattern.permute.xlu0 %v427_v1  ;;  %v237_v2 = vld [vmem:[%s481_s1] sm:$0xff]  ;;  %s373_s20 = sshll.u32 %s489_s12, 3 }
   0xe   : > { %241 = vperm.xlu0 %402, %v238_v0   ;;  %s219_s23 = scalar_lea.vmem %s480_s0, %s373_s20  ;;  %s235_s26 = scalar_lea.vmem %s483_s3, %s373_s20 }
   0xf   : > { %v236_v4 = vld [vmem:[%s219_s23] sm:$0xff] }
  0x12   : > { %247 = vperm.xlu0 %402, %v237_v2  }
  0x89   : > { %v242_v3 = vpop.permute.xlu0 %241 }
  0x8a   : > { %v244_v5 = vadd.f32 %v242_v3, %v236_v4 }
  0x8d   : > { %v248_v6 = vpop.permute.xlu0 %247 }
  0x8e   : > { %v250_v7 = vmul.f32 %v248_v6, %v244_v5 }
  0x90   : > { %251 = vst [vmem:[%s235_s26] sm:$0xff] %v250_v7 }
  0x91 PF: > { %s13_s14 = sadd.s32 1, %s425_s14   ;;  %s484_s12 = smov %s421_s13 }
  0x92   : > { %p10_p5 = scmp.ge.s32.totalorder %s13_s14, 4   ;;  %s485_s13 = smov %s487_s15 }
  0x94   :  { %12 = sbr.rel (!%p10_p5) target bundleno = 2 (0x2), region = 68 }

</bundles_post_ra>
